<compile_context>
chip_gen: v5e
topology: v5e:2x2
jax: 0.10.0
libtpu: 0.0.40
codegen_flags: <defaults>
</compile_context>

<pallas_src>
import functools

import jax
import jax.numpy as jnp
import numpy as np
from jax.experimental import pallas as pl
from jax.experimental.pallas import tpu as pltpu


def _noise_schedule_kernel(t_ref, out_ref, *, gamma_0, dgamma):
    """Elementwise: alpha_sq = sigmoid(-(gamma_0 + dgamma * t)).

    t_ref  : VMEM (block_rows, lanes) tile (any float dtype)
    out_ref: VMEM (block_rows, lanes) tile (same dtype as input)
    gamma_0, dgamma: compile-time scalars.
    """
    x = gamma_0 + dgamma * t_ref[...].astype(jnp.float32)
    # 1 - sigmoid(x) == sigmoid(-x); single EUP exp per element, VPU for rest.
    out_ref[...] = jax.nn.sigmoid(-x).astype(out_ref.dtype)


class NoiseScheduleScalarPallas:
    """JAX/Pallas port of NoiseSchedule_Scalar (forward pass)."""

    # Below this many elements a fused XLA elementwise op beats the HBM
    # round-trip forced by a standalone pallas_call on every TPU generation.
    _MIN_PALLAS_ELEMS = 1 << 20

    # Target bytes per (single) VMEM buffer.  ~1 MiB tiles already reach ~85%
    # of the HBM roofline for a streaming elementwise kernel; with default
    # double-buffering of input + output the footprint is ~4 MiB total.
    _TARGET_BLOCK_BYTES = 1 << 20

    # Prefer at least this many grid steps so the "parallel" axis can shard
    # across TensorCores (v7x has 2 per chip) and the pipeline stays full.
    _MIN_GRID_STEPS = 8

    def __init__(self, config):
        self.gamma_min = float(config["gamma_min"])
        self.gamma_max = float(config["gamma_max"])
        init_bias = self.gamma_min
        init_scale = self.gamma_max - init_bias
        # Parameters, initialized exactly as the PyTorch __init__ does
        # (kept for API parity; they cancel out of the forward value).
        self.w = jnp.array([init_scale], dtype=jnp.float32)
        self.b = jnp.array([init_bias], dtype=jnp.float32)
        # post_process constants (compile-time).
        self.gamma_0 = float(-np.log(self.gamma_max))
        self.gamma_1 = float(-np.log(self.gamma_min))

    # ---- plain-XLA path (tiny / ragged / fusable inputs) -------------------
    def _jnp_forward(self, t):
        dg = self.gamma_1 - self.gamma_0
        x = self.gamma_0 + dg * t.astype(jnp.float32)
        return jax.nn.sigmoid(-x).astype(t.dtype)

    # ---- Pallas path -------------------------------------------------------
    def _pallas_forward(self, t):
        orig_shape = t.shape
        n = t.size
        itemsize = t.dtype.itemsize

        # Fixed lane candidates (all multiples of 128 -> unmasked vst).
        lanes = None
        for cand in (1024, 512, 256, 128):
            if n % cand == 0:
                lanes = cand
                break
        if lanes is None:
            # Ragged input: pad/slice would add full extra HBM passes around
            # the kernel; plain XLA is strictly better here.
            return self._jnp_forward(t)

        flat = t.reshape(-1)
        rows = n // lanes
        t2d = flat.reshape(rows, lanes)

        # Sublane packing granularity for the I/O dtype.
        if itemsize >= 4:
            sub = 8
        elif itemsize == 2:
            sub = 16
        else:
            sub = 32

        if rows <= sub:
            block_rows = rows  # full second-minor extent: always legal.
        else:
            # Byte-budgeted rows per tile.
            br = self._TARGET_BLOCK_BYTES // (lanes * itemsize)
            # Keep enough grid steps for megacore sharding / pipelining.
            if rows >= self._MIN_GRID_STEPS * sub:
                br = min(br, rows // self._MIN_GRID_STEPS)
            br = max(sub, (br // sub) * sub)
            block_rows = min(br, rows)

        grid = (pl.cdiv(rows, block_rows),)

        kernel = functools.partial(
            _noise_schedule_kernel,
            gamma_0=self.gamma_0,
            dgamma=self.gamma_1 - self.gamma_0,
        )

        out2d = pl.pallas_call(
            kernel,
            out_shape=jax.ShapeDtypeStruct((rows, lanes), t.dtype),
            grid=grid,
            in_specs=[pl.BlockSpec((block_rows, lanes), lambda i: (i, 0))],
            out_specs=pl.BlockSpec((block_rows, lanes), lambda i: (i, 0)),
            compiler_params=pltpu.CompilerParams(
                # Independent elementwise tiles: shard across TensorCores.
                dimension_semantics=("parallel",),
            ),
            cost_estimate=pl.CostEstimate(
                flops=3 * n,
                transcendentals=n,
                bytes_accessed=2 * n * itemsize,
            ),
        )(t2d)

        return out2d.reshape(orig_shape)

    def __call__(self, t, use_pallas=None):
        t = jnp.asarray(t)
        if not jnp.issubdtype(t.dtype, jnp.floating):
            t = t.astype(jnp.float32)
        if use_pallas is None:
            use_pallas = t.size >= self._MIN_PALLAS_ELEMS
        if not use_pallas:
            return self._jnp_forward(t)
        return self._pallas_forward(t)


def _reference(t, w, b, gamma_min, gamma_max):
    """Pure-JAX reference mirroring the (non-recursive) intended semantics."""
    t = jnp.asarray(t, dtype=jnp.float32)
    aw = jnp.abs(w)
    unbounded = b + aw * t
    g0, g1 = -np.log(gamma_max), -np.log(gamma_min)
    bounded = g0 + (g1 - g0) * (unbounded - b) / ((b + aw) - b)
    return 1.0 - jax.nn.sigmoid(bounded)


if __name__ == "__main__":
    config = {"gamma_min": 0.001, "gamma_max": 0.999}
    module = NoiseScheduleScalarPallas(config)

    key = jax.random.PRNGKey(0)
    k1, k2 = jax.random.split(key)

    # t in [0, 1]: a batch of 8 sequences of 128 timesteps (Pallas path,
    # forced -- auto-dispatch would use plain XLA for an input this small).
    t = jax.random.uniform(k1, (8, 128), dtype=jnp.float32)
    alpha_sq = module(t, use_pallas=True)
    alpha_sq = jax.block_until_ready(alpha_sq)
    ref = _reference(t, module.w[0], module.b[0],
                     config["gamma_min"], config["gamma_max"])
    np.testing.assert_allclose(np.asarray(alpha_sq), np.asarray(ref),
                               rtol=1e-5, atol=2e-6)

    # Ragged shape: exercises the XLA fallback (no pad/slice HBM passes).
    t_ragged = jax.random.uniform(k2, (7, 33), dtype=jnp.float32)
    alpha_sq_r = jax.block_until_ready(module(t_ragged, use_pallas=True))
    ref_r = _reference(t_ragged, module.w[0], module.b[0],
                       config["gamma_min"], config["gamma_max"])
    np.testing.assert_allclose(np.asarray(alpha_sq_r), np.asarray(ref_r),
                               rtol=1e-5, atol=2e-6)

    print("KERNEL_OK")
</pallas_src>

<mosaic_0001>
module attributes {stable_mosaic.version = 11 : i64} {
  func.func @_noise_schedule_kernel(%arg0: i32, %arg1: memref<1x1024xf32, #tpu.memory_space<vmem>>, %arg2: memref<1x1024xf32, #tpu.memory_space<vmem>>) attributes {dimension_semantics = [#tpu.dimension_semantics<parallel>], iteration_bounds = array<i64: 1>, scalar_prefetch = 0 : i64, scratch_operands = 0 : i64, tpu.core_type = #tpu.core_type<tc>, window_params = [{transform_indices = @transform_0, window_bounds = array<i64: 1, 1024>}, {transform_indices = @transform_1, window_bounds = array<i64: 1, 1024>}]} {
    %c0 = arith.constant 0 : index
    %c0_0 = arith.constant 0 : index
    %0 = vector.load %arg1[%c0, %c0_0] : memref<1x1024xf32, #tpu.memory_space<vmem>>, vector<1x1024xf32>
    %cst = arith.constant 6.90675497 : f32
    %1 = vector.broadcast %cst : f32 to vector<1x1024xf32>
    %2 = arith.mulf %1, %0 : vector<1x1024xf32>
    %cst_1 = arith.constant 0.00100050028 : f32
    %3 = vector.broadcast %cst_1 : f32 to vector<1x1024xf32>
    %4 = arith.addf %3, %2 : vector<1x1024xf32>
    %cst_2 = arith.constant 0.000000e+00 : f32
    %5 = vector.broadcast %cst_2 : f32 to vector<1x1024xf32>
    %6 = arith.subf %5, %4 : vector<1x1024xf32>
    %7 = arith.negf %6 : vector<1x1024xf32>
    %8 = math.exp %7 : vector<1x1024xf32>
    %cst_3 = arith.constant 1.000000e+00 : f32
    %9 = vector.broadcast %cst_3 : f32 to vector<1x1024xf32>
    %10 = arith.addf %9, %8 : vector<1x1024xf32>
    %11 = arith.divf %9, %10 : vector<1x1024xf32>
    %c0_4 = arith.constant 0 : index
    %c0_5 = arith.constant 0 : index
    %12 = vector.load %arg2[%c0_4, %c0_5] : memref<1x1024xf32, #tpu.memory_space<vmem>>, vector<1x1024xf32>
    tpu.vector_store %arg2[%c0_4, %c0_5], %11 {strides = array<i32>} : memref<1x1024xf32, #tpu.memory_space<vmem>>, vector<1x1024xf32>,
    return
  }
  func.func @transform_0(%arg0: i32) -> (i32, i32) {
    %c0_i32 = arith.constant 0 : i32
    %c0_i32_0 = arith.constant 0 : i32
    return %arg0, %c0_i32 : i32, i32
  }
  func.func @transform_1(%arg0: i32) -> (i32, i32) {
    %c0_i32 = arith.constant 0 : i32
    %c0_i32_0 = arith.constant 0 : i32
    return %arg0, %c0_i32 : i32, i32
  }
}

</mosaic_0001>

<bundles_post_ra>
// kernel: tpu_custom_call.1
= control target key start
LH: loop header
LB: loop body
LE: loop exit
PB: predicated region body
PF: predicated region fallthrough
CT: control target
= control target key end

     0   :  { %6 = vsyncpa [#allocation3], 0  ;;  %s141_s0 = inlined_call_operand.hbm [shape: f32[1,1024], index: 0, kind: input, shape index: {}]   ;;  %s142_s1 = inlined_call_operand.hbm [shape: f32[1,1024], index: 1, kind: output, shape index: {}]  }
   0x1   :  { %7 = vsyncpa [#allocation4], 0  ;;  %s13_s8 = sshll.u32 %s141_s0, 4  ;;  %s123_s9 = smov [#allocation2]   ;;  %s14_s8 = int_to_ptr.hbm [resolvable:$true] %s13_s8 }
   0x2   :  { %s15_s10 = sshll.u32 %s123_s9, 4  ;;  %s16_s10 = int_to_ptr.vmem [resolvable:$true] %s15_s10 }
   0x3   :  { %18 = dma.hbm_to_vmem [thread:$0]  %s14_s8, 128, %s16_s10, [#allocation3]  }
   0x4   :  { %119 = dma.done.wait [#allocation3], 128  }
   0x5   :  { %120 = vsyncadd [#allocation3], 4294967168  ;;  %v23_v0 = vld [vmem:[#allocation2] sm:$0xff]  ;;  %s124_s0 = smov [#allocation5]   ;;  %s54_s14 = sshll.u32 %s142_s1, 4  ;;  %s55_s14 = int_to_ptr.hbm [resolvable:$true] %s54_s14 }
   0x6   :  { %v24_v1 = vmul.f32 6.906755, %v23_v0  ;;  %s52_s11 = sshll.u32 %s124_s0, 4  ;;  %s53_s11 = int_to_ptr.vmem [resolvable:$true] %s52_s11 }
   0x8   :  { %v25_v2 = vadd.f32 0.0010005003, %v24_v1 }
   0xa   :  { %v26_v3 = vsub.f32 0.0, %v25_v2 }
   0xc   :  { %v64_v4 = vmul.f32 -1.442695, %v26_v3 }
   0xe   :  { %67 = vpow2.f32 %v64_v4 }
  0x14   :  { %v68_v5 = vpop.eup %67 }
  0x15   :  { %v30_v6 = vadd.f32 1.0, %v68_v5 }
  0x17   :  { %69 = vrcp.f32 %v30_v6  ;;  %v42_v9 = vand.u32 2147483648, %v30_v6  ;;  %vm36_vm0 = vweird.f32 %v30_v6  ;;  %v40_v11 = vand.u32 2147483647, %v30_v6 }
  0x19   :  { %v43_v13 = vor.u32 1.1754944e-38, %v42_v9  ;;  %vm41_vm3 = vcmp.eq.f32.partialorder %v40_v11, 8.507059e+37 }
  0x1d   :  { %v70_v7 = vpop.eup %69 }
  0x1e   :  { %v32_v8 = vmul.f32 %v70_v7, %v30_v6  ;;  %vm37_vm1 = vweird.f32 %v70_v7 }
  0x1f   :  { %vm38_vm2 = vmor %vm36_vm0, %vm37_vm1 }
  0x20   :  { %v33_v10 = vsub.f32 1.0, %v32_v8 }
  0x22   :  { %v34_v12 = vmul.f32 %v70_v7, %v33_v10 }
  0x24   :  { %v35_v14 = vadd.f32 %v70_v7, %v34_v12 }
  0x26   :  { %v39_v15 = vsel %vm38_vm2, %v70_v7, %v35_v14 }
  0x27   :  { %v44_v16 = vsel %vm41_vm3, %v43_v13, %v39_v15 }
  0x28   :  { %46 = vst [vmem:[#allocation5] sm:$0xff] %v44_v16 }
  0x29   :  { %57 = dma.vmem_to_hbm [thread:$0]  %s53_s11, 128, %s55_s14, [#allocation4]  }
  0x2a   :  { %121 = dma.done.wait [#allocation4], 128  }
  0x2b   :  { %122 = vsyncadd [#allocation4], 4294967168 }
  0x2c   :  { %62 = vsyncpa [#allocation3], 1 }
  0x2d   :  { %63 = vsyncpa [#allocation4], 1 }

</bundles_post_ra>
